<compile_context>
chip_gen: v5e
topology: v5e:2x2
jax: 0.10.0
libtpu: 0.0.40
codegen_flags: <defaults>
</compile_context>

<pallas_src>
import jax
import jax.numpy as jnp
from jax.experimental import pallas as pl
from jax.experimental.pallas import tpu as pltpu


def _drop_path_kernel(scale_ref, x_ref, o_ref):
    # scale_ref: (TB, 1) float32 per-sample scale (0.0 or 1/keep_prob)
    # x_ref / o_ref: (TB, TF) tile of the flattened (B, F) activation
    x = x_ref[...]
    s = scale_ref[...]                                   # (TB, 1) f32
    if jnp.issubdtype(x_ref.dtype, jnp.floating):
        # Multiply natively in the activation dtype (bf16 VALU on v6e/v7x;
        # the compiler upcasts internally on v5e).  scale is exactly 0 or
        # 1/keep_prob, so the extra rounding is one ulp of the product.
        o_ref[...] = (x * s.astype(x.dtype)).astype(o_ref.dtype)
    else:
        o_ref[...] = (x.astype(jnp.float32) * s).astype(o_ref.dtype)


def _pick_tile(full, unit, cap):
    """Largest multiple of `unit` <= min(full, cap); falls back to the full
    dimension (always a legal TPU block) when full < unit."""
    if full <= unit:
        return full
    t = min(cap, full)
    t -= t % unit
    return t if t > 0 else full


def _physical_vmem_bytes():
    """Per-core VMEM capacity; conservative v7x fallback if the query fails."""
    try:
        return int(pltpu.get_tpu_info().vmem_capacity_bytes)
    except Exception:
        return 64 << 20


def drop_path(x, drop_prob, training, key, *,
              min_pallas_bytes=1 << 20, donate_x=False):
    """Functional equivalent of timm-style drop_path (forward pass)."""
    if drop_prob is None or drop_prob == 0.0 or not training:
        return x
    keep_prob = 1.0 - float(drop_prob)

    orig_shape = x.shape
    B = orig_shape[0]

    # Per-sample scale: floor(keep_prob + U[0,1)) * (1/keep_prob) -> 0 or 1/keep_prob.
    u = jax.random.uniform(key, (B,), dtype=jnp.float32)
    scale = jnp.floor(keep_prob + u) * (1.0 / keep_prob)          # (B,) f32

    nbytes = x.size * x.dtype.itemsize
    if nbytes < min_pallas_bytes:
        # Small-tensor / fusion fast path: plain XLA broadcast multiply
        # (can fuse into neighboring ops and avoid a dedicated HBM round-trip).
        s_b = scale.reshape((B,) + (1,) * (x.ndim - 1))
        return (x.astype(jnp.float32) * s_b).astype(x.dtype)

    # Flatten to a lane-dense 2D view (B, F).
    x2 = x.reshape(B, -1)
    F = x2.shape[1]
    itemsize = x2.dtype.itemsize
    sub_unit = {4: 8, 2: 16, 1: 32}.get(itemsize, 8)

    # Generation-aware VMEM budget / tile size.
    phys_vmem = _physical_vmem_bytes()
    vmem_limit = int(min(phys_vmem // 2, 48 << 20))       # v7x: 32 MiB, v5e/v6e: 48 MiB
    # 2x input + 2x output double buffers = 4 tiles; keep ~20% headroom.
    target_tile_bytes = max(1 << 20, (vmem_limit * 4) // (5 * 4))

    # TF-first tile selection: maximize lane-dense width, then derive TB.
    tf_cap = max(128, target_tile_bytes // (sub_unit * itemsize))
    TF = _pick_tile(F, 128, tf_cap)
    tb_cap = max(sub_unit, target_tile_bytes // (TF * itemsize))
    TB = _pick_tile(B, sub_unit, tb_cap)

    grid = (pl.cdiv(B, TB), pl.cdiv(F, TF))

    extra = {}
    if donate_x:
        # Alias x (input index 1) to the output: no extra HBM output buffer
        # (only effective if the caller actually donates x at the jit boundary).
        extra["input_output_aliases"] = {1: 0}

    out = pl.pallas_call(
        _drop_path_kernel,
        out_shape=jax.ShapeDtypeStruct(x2.shape, x2.dtype),
        grid=grid,
        in_specs=[
            pl.BlockSpec((TB, 1), lambda i, j: (i, 0)),           # scale (B, 1) f32
            pl.BlockSpec((TB, TF), lambda i, j: (i, j)),          # x tile
        ],
        out_specs=pl.BlockSpec((TB, TF), lambda i, j: (i, j)),
        compiler_params=pltpu.CompilerParams(
            dimension_semantics=("parallel", "parallel"),
            vmem_limit_bytes=vmem_limit,
        ),
        cost_estimate=pl.CostEstimate(
            flops=x2.size,
            transcendentals=0,
            bytes_accessed=2 * nbytes + 4 * B,
        ),
        **extra,
    )(scale.reshape(B, 1), x2)

    return out.reshape(orig_shape)


class DropPath:
    """Drop paths (Stochastic Depth) per sample (main path of residual blocks)."""

    def __init__(self, drop_prob=None):
        self.drop_prob = drop_prob
        self.training = True

    def __call__(self, x, key):
        return drop_path(x, self.drop_prob, self.training, key)

    def extra_repr(self):
        return 'p={}'.format(self.drop_prob)


if __name__ == "__main__":
    key = jax.random.PRNGKey(0)
    kx, kdrop = jax.random.split(key)

    drop_prob = 0.25
    keep_prob = 1.0 - drop_prob

    def reference(x, k):
        u = jax.random.uniform(k, (x.shape[0],), dtype=jnp.float32)
        s = (jnp.floor(keep_prob + u) * (1.0 / keep_prob)).reshape(
            (-1,) + (1,) * (x.ndim - 1))
        return (x.astype(jnp.float32) * s).astype(x.dtype)

    # 1) Small NCHW input (batch=2, channels=4, spatial=16x16); force the
    #    Pallas path so the kernel itself is exercised.
    x_small = jax.random.normal(kx, (2, 4, 16, 16), dtype=jnp.float32)
    out = jax.block_until_ready(
        drop_path(x_small, drop_prob, True, kdrop, min_pallas_bytes=0))
    ref = reference(x_small, kdrop)
    assert out.shape == x_small.shape and out.dtype == x_small.dtype
    assert jnp.allclose(out, ref, atol=1e-6, rtol=1e-6), "small f32 mismatch"

    # 2) Larger input exercises multi-sample, lane-dense tiling
    #    (B multiple of 8, F multiple of 128) via the Pallas path.
    kx2, kdrop2 = jax.random.split(kdrop)
    x_big = jax.random.normal(kx2, (16, 8, 32, 32), dtype=jnp.float32)
    out_big = jax.block_until_ready(
        drop_path(x_big, drop_prob, True, kdrop2, min_pallas_bytes=0))
    ref_big = reference(x_big, kdrop2)
    assert jnp.allclose(out_big, ref_big, atol=1e-6, rtol=1e-6), "big f32 mismatch"

    # 3) bf16 input: multiply happens natively in bf16 inside the kernel.
    x_bf16 = x_big.astype(jnp.bfloat16)
    out_bf16 = jax.block_until_ready(
        drop_path(x_bf16, drop_prob, True, kdrop2, min_pallas_bytes=0))
    ref_bf16 = reference(x_bf16, kdrop2)
    assert out_bf16.dtype == jnp.bfloat16
    assert jnp.allclose(out_bf16.astype(jnp.float32),
                        ref_bf16.astype(jnp.float32),
                        atol=1e-2, rtol=1e-2), "bf16 mismatch"

    # 4) Eval mode and drop_prob=0 are identity.
    module = DropPath(drop_prob=drop_prob)
    module.training = False
    out_eval = jax.block_until_ready(module(x_big, kdrop2))
    assert jnp.array_equal(out_eval, x_big)
    out_p0 = jax.block_until_ready(drop_path(x_big, 0.0, True, kdrop2))
    assert jnp.array_equal(out_p0, x_big)

    print("KERNEL_OK")
</pallas_src>

<mosaic_0001>
module attributes {stable_mosaic.version = 11 : i64} {
  func.func @_drop_path_kernel(%arg0: i32, %arg1: i32, %arg2: memref<2x1xf32, #tpu.memory_space<vmem>>, %arg3: memref<2x1024xf32, #tpu.memory_space<vmem>>, %arg4: memref<2x1024xf32, #tpu.memory_space<vmem>>) attributes {dimension_semantics = [#tpu.dimension_semantics<parallel>, #tpu.dimension_semantics<parallel>], iteration_bounds = array<i64: 1, 1>, scalar_prefetch = 0 : i64, scratch_operands = 0 : i64, tpu.core_type = #tpu.core_type<tc>, window_params = [{transform_indices = @transform_0, window_bounds = array<i64: 2, 1>}, {transform_indices = @transform_1, window_bounds = array<i64: 2, 1024>}, {transform_indices = @transform_2, window_bounds = array<i64: 2, 1024>}]} {
    %c0 = arith.constant 0 : index
    %c0_0 = arith.constant 0 : index
    %0 = vector.load %arg3[%c0, %c0_0] : memref<2x1024xf32, #tpu.memory_space<vmem>>, vector<2x1024xf32>
    %c0_1 = arith.constant 0 : index
    %c0_2 = arith.constant 0 : index
    %1 = vector.load %arg2[%c0_1, %c0_2] : memref<2x1xf32, #tpu.memory_space<vmem>>, vector<2x1xf32>
    %2 = vector.broadcast %1 : vector<2x1xf32> to vector<2x1024xf32>
    %3 = arith.mulf %0, %2 : vector<2x1024xf32>
    %c0_3 = arith.constant 0 : index
    %c0_4 = arith.constant 0 : index
    %4 = vector.load %arg4[%c0_3, %c0_4] : memref<2x1024xf32, #tpu.memory_space<vmem>>, vector<2x1024xf32>
    tpu.vector_store %arg4[%c0_3, %c0_4], %3 {strides = array<i32>} : memref<2x1024xf32, #tpu.memory_space<vmem>>, vector<2x1024xf32>,
    return
  }
  func.func @transform_0(%arg0: i32, %arg1: i32) -> (i32, i32) {
    %c0_i32 = arith.constant 0 : i32
    %c0_i32_0 = arith.constant 0 : i32
    return %arg0, %c0_i32 : i32, i32
  }
  func.func @transform_1(%arg0: i32, %arg1: i32) -> (i32, i32) {
    %c0_i32 = arith.constant 0 : i32
    return %arg0, %arg1 : i32, i32
  }
  func.func @transform_2(%arg0: i32, %arg1: i32) -> (i32, i32) {
    %c0_i32 = arith.constant 0 : i32
    return %arg0, %arg1 : i32, i32
  }
}

</mosaic_0001>

<bundles_post_ra>
// kernel: tpu_custom_call.1
= control target key start
LH: loop header
LB: loop body
LE: loop exit
PB: predicated region body
PF: predicated region fallthrough
CT: control target
= control target key end

     0   :  { %7 = vsyncpa [#allocation3], 0  ;;  %s144_s0 = inlined_call_operand.vmem [shape: f32[2,1], index: 0, kind: input, shape index: {}]   ;;  %s145_s1 = inlined_call_operand.hbm [shape: f32[2,1024], index: 1, kind: input, shape index: {}]   ;;  %s146_s2 = inlined_call_operand.hbm [shape: f32[2,1024], index: 2, kind: output, shape index: {}]  }
   0x1   :  { %8 = vsyncpa [#allocation4], 0  ;;  %s16_s11 = sshll.u32 %s145_s1, 4  ;;  %s116_s12 = smov [#allocation2]   ;;  %s17_s11 = int_to_ptr.hbm [resolvable:$true] %s16_s11 }
   0x2   :  { %s18_s13 = sshll.u32 %s116_s12, 4  ;;  %s19_s13 = int_to_ptr.vmem [resolvable:$true] %s18_s13 }
   0x3   :  { %21 = dma.hbm_to_vmem [thread:$0]  %s17_s11, 256, %s19_s13, [#allocation3]  }
   0x4   :  { %112 = dma.done.wait [#allocation3], 256  }
   0x5   :  { %113 = vsyncadd [#allocation3], 4294967040  ;;  %v117_v0 = vmov 0   ;;  %v28_v1 = vld [vmem:[%s144_s0] sm:$0x3]  ;;  %v27_v7 = vld [vmem:[#allocation2 + $0x8] sm:$0xff] }
   0x6   :  { %63 = vset.pattern.permute.xlu0 %v117_v0  ;;  %v118_v2 = vmov 269488144   ;;  %v26_v6 = vld [vmem:[#allocation2] sm:$0xff]  ;;  %s119_s1 = smov [#allocation5]   ;;  %s49_s19 = sshll.u32 %s146_s2, 4  ;;  %s50_s19 = int_to_ptr.hbm [resolvable:$true] %s49_s19 }
   0x7   :  { %31 = vperm.xlu0 %63, %v28_v1   ;;  %v34_v3 = vunpack.c.l.s4 %v118_v2  ;;  %s47_s16 = sshll.u32 %s119_s1, 4  ;;  %s48_s16 = int_to_ptr.vmem [resolvable:$true] %s47_s16 }
   0x9   :  { %v35_v4 = vunpack.c.0.s8 %v34_v3 }
  0x79   :  { %v32_v5 = vpop.permute.xlu0 %31 }
  0x7a   :  { %v36_v8 = vperm.slane %v32_v5, %v35_v4 }
  0x7c   :  { %v38_v9 = vmul.f32 %v36_v8, %v26_v6  ;;  %v39_v10 = vmul.f32 %v36_v8, %v27_v7 }
  0x7e   :  { %40 = vst [vmem:[#allocation5] sm:$0xff] %v38_v9 }
  0x7f   :  { %41 = vst [vmem:[#allocation5 + $0x8] sm:$0xff] %v39_v10 }
  0x80   :  { %52 = dma.vmem_to_hbm [thread:$0]  %s48_s16, 256, %s50_s19, [#allocation4]  }
  0x81   :  { %114 = dma.done.wait [#allocation4], 256  }
  0x82   :  { %115 = vsyncadd [#allocation4], 4294967040 }
  0x83   :  { %57 = vsyncpa [#allocation3], 1 }
  0x84   :  { %58 = vsyncpa [#allocation4], 1 }

</bundles_post_ra>
